<compile_context>
chip_gen: v5e
topology: v5e:2x2
jax: 0.10.0
libtpu: 0.0.40
codegen_flags: <defaults>
</compile_context>

<pallas_src>
import functools

import jax
import jax.numpy as jnp
from jax import lax
from jax.experimental import pallas as pl
from jax.experimental.pallas import tpu as pltpu


# ------------------------------ fused kernel --------------------------------

def _fused_attention_kernel(x_ref, ctx_ref, wq_ref, wkv_ref, wo_ref, bo_ref,
                            o_ref, *, heads, dim_head, scale):
    """One batch element per grid step.

    x_ref:   (1, N, Dq)      queries' input
    ctx_ref: (1, M, Dc)      context input (== x for self-attention)
    wq_ref:  (Dq, inner)     to_q weight (pre-transposed)
    wkv_ref: (Dc, 2*inner)   to_kv weight (pre-transposed)
    wo_ref:  (inner, Dq)     to_out weight (pre-transposed)
    bo_ref:  (1, Dq)         to_out bias
    o_ref:   (1, N, Dq)      output
    """
    x = x_ref[0]            # (N, Dq)
    ctx = ctx_ref[0]        # (M, Dc)
    inner = heads * dim_head

    # Projections stay resident in VMEM / vregs.  Fold the softmax scale into
    # q (N*inner elements) rather than scaling sim (N*M elements).
    q = jnp.dot(x, wq_ref[...], preferred_element_type=jnp.float32) * scale
    kv = jnp.dot(ctx, wkv_ref[...], preferred_element_type=jnp.float32)
    k = kv[:, :inner]
    v = kv[:, inner:]

    n = x.shape[0]
    dq_out = o_ref.shape[-1]
    acc = jnp.zeros((n, dq_out), dtype=jnp.float32)

    # TODO(synk): optional boolean `mask` path (masked_fill with -finfo.max)
    # is not wired in; the reference call uses mask=None.
    for h in range(heads):  # heads is small & static -> unrolled at trace time
        lo = h * dim_head
        qh = q[:, lo:lo + dim_head]                       # (N, d)
        kh = k[:, lo:lo + dim_head]                       # (M, d)
        vh = v[:, lo:lo + dim_head]                       # (M, d)

        # sim[i, j] = sum_d q[i, d] * k[j, d]  (no explicit transpose of k)
        sim = lax.dot_general(
            qh, kh,
            dimension_numbers=(((1,), (1,)), ((), ())),
            preferred_element_type=jnp.float32)           # (N, M)

        sim = sim - jnp.max(sim, axis=-1, keepdims=True)  # stable softmax (f32)
        p = jnp.exp(sim)
        p = p * pl.reciprocal(jnp.sum(p, axis=-1, keepdims=True), approx=True)

        oh = jnp.dot(p, vh, preferred_element_type=jnp.float32)  # (N, d)

        # Fold this head's contribution directly into the output projection:
        # out @ W_o == sum_h out_h @ W_o[h*d:(h+1)*d, :]
        acc = acc + jnp.dot(oh, wo_ref[lo:lo + dim_head, :],
                            preferred_element_type=jnp.float32)

    o_ref[0] = (acc + bo_ref[...]).astype(o_ref.dtype)


# -------------------------------- wrapper ------------------------------------

def attention_forward(x, params, heads, context=None, mask=None):
    """Pallas version of Attention.forward (eval mode, drop_path = identity)."""
    del mask  # TODO(synk): mask path not implemented (reference uses mask=None)
    B, N, Dq = x.shape
    ctx = x if context is None else context
    Bc, M, Dc = ctx.shape
    assert Bc == B

    inner = params["w_q_t"].shape[1]
    dim_head = inner // heads
    scale = dim_head ** (-0.5)
    bias2d = params["b_out"].reshape(1, Dq)

    kernel = functools.partial(
        _fused_attention_kernel, heads=heads, dim_head=dim_head, scale=scale)

    # TODO(synk): for long sequences (large M), switch the in-kernel softmax to
    # a flash-style online-softmax with a KV grid axis instead of materializing
    # the full (N, M) sim matrix.
    return pl.pallas_call(
        kernel,
        out_shape=jax.ShapeDtypeStruct((B, N, Dq), x.dtype),
        grid=(B,),
        in_specs=[
            pl.BlockSpec((1, N, Dq), lambda b: (b, 0, 0)),        # x
            pl.BlockSpec((1, M, Dc), lambda b: (b, 0, 0)),        # context
            pl.BlockSpec((Dq, inner), lambda b: (0, 0)),          # w_q_t
            pl.BlockSpec((Dc, 2 * inner), lambda b: (0, 0)),      # w_kv_t
            pl.BlockSpec((inner, Dq), lambda b: (0, 0)),          # w_out_t
            pl.BlockSpec((1, Dq), lambda b: (0, 0)),              # b_out
        ],
        out_specs=pl.BlockSpec((1, N, Dq), lambda b: (b, 0, 0)),
        compiler_params=pltpu.CompilerParams(
            dimension_semantics=("parallel",)),
    )(x, ctx, params["w_q_t"], params["w_kv_t"], params["w_out_t"], bias2d)


# --------------------------- pure-JAX reference ------------------------------

def reference_forward(x, params, heads, context=None):
    B, N, Dq = x.shape
    ctx = x if context is None else context
    inner = params["w_q_t"].shape[1]
    dim_head = inner // heads
    scale = dim_head ** (-0.5)

    q = x @ params["w_q_t"]
    kv = ctx @ params["w_kv_t"]
    k, v = kv[..., :inner], kv[..., inner:]

    def split(t):
        return (t.reshape(B, -1, heads, dim_head)
                 .transpose(0, 2, 1, 3)
                 .reshape(B * heads, -1, dim_head))

    qh, kh, vh = split(q), split(k), split(v)
    sim = jnp.einsum('bid,bjd->bij', qh, kh) * scale
    attn = jax.nn.softmax(sim, axis=-1)
    out = jnp.einsum('bij,bjd->bid', attn, vh)
    out = (out.reshape(B, heads, N, dim_head)
              .transpose(0, 2, 1, 3)
              .reshape(B, N, inner))
    return out @ params["w_out_t"] + params["b_out"]


# --------------------------------- main --------------------------------------

if __name__ == "__main__":
    # Small shapes: batch=2, seq=8, query_dim=32, heads=2, dim_head=16 -> inner=32
    B, N, query_dim = 2, 8, 32
    heads, dim_head = 2, 16
    inner_dim = heads * dim_head
    context_dim = query_dim  # context defaults to x (self-attention)

    key = jax.random.PRNGKey(0)
    k_x, k_q, k_kv, k_o, k_b = jax.random.split(key, 5)

    x = jax.random.normal(k_x, (B, N, query_dim), dtype=jnp.float32)

    # Deterministic synthetic parameters (stored pre-transposed: (in, out)).
    params = {
        "w_q_t":  0.05 * jax.random.normal(k_q,  (query_dim,   inner_dim),     jnp.float32),
        "w_kv_t": 0.05 * jax.random.normal(k_kv, (context_dim, 2 * inner_dim), jnp.float32),
        "w_out_t": 0.05 * jax.random.normal(k_o, (inner_dim,   query_dim),     jnp.float32),
        "b_out":  0.01 * jax.random.normal(k_b,  (query_dim,),                 jnp.float32),
    }

    out = attention_forward(x, params, heads)
    out = jax.block_until_ready(out)

    ref = reference_forward(x, params, heads)
    assert out.shape == (B, N, query_dim)
    # Tolerance relaxed slightly vs exact math because the softmax denominator
    # uses the EUP approximate reciprocal.
    assert jnp.allclose(out, ref, atol=1e-3, rtol=1e-3), "mismatch vs reference"

    print("KERNEL_OK")
</pallas_src>

<mosaic_0001>
module attributes {stable_mosaic.version = 11 : i64} {
  func.func @_fused_attention_kernel(%arg0: i32, %arg1: memref<1x8x32xf32, #tpu.memory_space<vmem>>, %arg2: memref<1x8x32xf32, #tpu.memory_space<vmem>>, %arg3: memref<32x32xf32, #tpu.memory_space<vmem>>, %arg4: memref<32x64xf32, #tpu.memory_space<vmem>>, %arg5: memref<32x32xf32, #tpu.memory_space<vmem>>, %arg6: memref<1x32xf32, #tpu.memory_space<vmem>>, %arg7: memref<1x8x32xf32, #tpu.memory_space<vmem>>) attributes {dimension_semantics = [#tpu.dimension_semantics<parallel>], iteration_bounds = array<i64: 2>, scalar_prefetch = 0 : i64, scratch_operands = 0 : i64, tpu.core_type = #tpu.core_type<tc>, window_params = [{transform_indices = @transform_0, window_bounds = array<i64: 1, 8, 32>}, {transform_indices = @transform_1, window_bounds = array<i64: 1, 8, 32>}, {pipeline_mode = #tpu.pipeline_mode<synchronous>, transform_indices = @transform_2, window_bounds = array<i64: 32, 32>}, {pipeline_mode = #tpu.pipeline_mode<synchronous>, transform_indices = @transform_3, window_bounds = array<i64: 32, 64>}, {pipeline_mode = #tpu.pipeline_mode<synchronous>, transform_indices = @transform_4, window_bounds = array<i64: 32, 32>}, {pipeline_mode = #tpu.pipeline_mode<synchronous>, transform_indices = @transform_5, window_bounds = array<i64: 1, 32>}, {transform_indices = @transform_6, window_bounds = array<i64: 1, 8, 32>}]} {
    %c0 = arith.constant 0 : index
    %c0_0 = arith.constant 0 : index
    %c0_1 = arith.constant 0 : index
    %0 = vector.load %arg1[%c0, %c0_0, %c0_1] : memref<1x8x32xf32, #tpu.memory_space<vmem>>, vector<1x8x32xf32>
    %1 = vector.shape_cast %0 : vector<1x8x32xf32> to vector<8x32xf32>
    %c0_2 = arith.constant 0 : index
    %c0_3 = arith.constant 0 : index
    %c0_4 = arith.constant 0 : index
    %2 = vector.load %arg2[%c0_2, %c0_3, %c0_4] : memref<1x8x32xf32, #tpu.memory_space<vmem>>, vector<1x8x32xf32>
    %3 = vector.shape_cast %2 : vector<1x8x32xf32> to vector<8x32xf32>
    %c0_5 = arith.constant 0 : index
    %c0_6 = arith.constant 0 : index
    %4 = vector.load %arg3[%c0_5, %c0_6] : memref<32x32xf32, #tpu.memory_space<vmem>>, vector<32x32xf32>
    %cst = arith.constant dense<0.000000e+00> : vector<8x32xf32>
    %5 = tpu.matmul %1, %4, %cst {dimension_numbers = #tpu.dot_dimension_numbers<[1], [0], [0], [1], [0, 0, 1, 1], [], []>} : vector<8x32xf32>, vector<32x32xf32>, vector<8x32xf32> -> vector<8x32xf32>
    %cst_7 = arith.constant 2.500000e-01 : f32
    %6 = vector.broadcast %cst_7 : f32 to vector<8x32xf32>
    %7 = arith.mulf %5, %6 : vector<8x32xf32>
    %c0_8 = arith.constant 0 : index
    %c0_9 = arith.constant 0 : index
    %8 = vector.load %arg4[%c0_8, %c0_9] : memref<32x64xf32, #tpu.memory_space<vmem>>, vector<32x64xf32>
    %cst_10 = arith.constant dense<0.000000e+00> : vector<8x64xf32>
    %9 = tpu.matmul %3, %8, %cst_10 {dimension_numbers = #tpu.dot_dimension_numbers<[1], [0], [0], [1], [0, 0, 1, 1], [], []>} : vector<8x32xf32>, vector<32x64xf32>, vector<8x64xf32> -> vector<8x64xf32>
    %10 = vector.extract_strided_slice %9 {offsets = [0, 0], sizes = [8, 32], strides = [1, 1]} : vector<8x64xf32> to vector<8x32xf32>
    %11 = vector.extract_strided_slice %9 {offsets = [0, 32], sizes = [8, 32], strides = [1, 1]} : vector<8x64xf32> to vector<8x32xf32>
    %cst_11 = arith.constant 0.000000e+00 : f32
    %12 = vector.broadcast %cst_11 : f32 to vector<8x32xf32>
    %13 = vector.extract_strided_slice %7 {offsets = [0, 0], sizes = [8, 16], strides = [1, 1]} : vector<8x32xf32> to vector<8x16xf32>
    %14 = vector.extract_strided_slice %10 {offsets = [0, 0], sizes = [8, 16], strides = [1, 1]} : vector<8x32xf32> to vector<8x16xf32>
    %15 = vector.extract_strided_slice %11 {offsets = [0, 0], sizes = [8, 16], strides = [1, 1]} : vector<8x32xf32> to vector<8x16xf32>
    %cst_12 = arith.constant dense<0.000000e+00> : vector<8x8xf32>
    %16 = tpu.matmul %13, %14, %cst_12 {dimension_numbers = #tpu.dot_dimension_numbers<[1], [1], [0], [0], [0, 0, 1, 0], [], []>} : vector<8x16xf32>, vector<8x16xf32>, vector<8x8xf32> -> vector<8x8xf32>
    %cst_13 = arith.constant dense<0xFF800000> : vector<8xf32>
    %17 = vector.multi_reduction <maximumf>, %16, %cst_13 [1] : vector<8x8xf32> to vector<8xf32>
    %18 = vector.shape_cast %17 : vector<8xf32> to vector<8x1xf32>
    %19 = vector.broadcast %18 : vector<8x1xf32> to vector<8x8xf32>
    %20 = arith.subf %16, %19 : vector<8x8xf32>
    %21 = math.exp %20 : vector<8x8xf32>
    %cst_14 = arith.constant dense<0.000000e+00> : vector<8xf32>
    %22 = vector.multi_reduction <add>, %21, %cst_14 [1] : vector<8x8xf32> to vector<8xf32>
    %23 = vector.shape_cast %22 : vector<8xf32> to vector<8x1xf32>
    %24 = tpu.reciprocal %23 {approx = true} : vector<8x1xf32> -> vector<8x1xf32>
    %25 = vector.broadcast %24 : vector<8x1xf32> to vector<8x8xf32>
    %26 = arith.mulf %21, %25 : vector<8x8xf32>
    %cst_15 = arith.constant dense<0.000000e+00> : vector<8x16xf32>
    %27 = tpu.matmul %26, %15, %cst_15 {dimension_numbers = #tpu.dot_dimension_numbers<[1], [0], [0], [1], [0, 0, 1, 1], [], []>} : vector<8x8xf32>, vector<8x16xf32>, vector<8x16xf32> -> vector<8x16xf32>
    %c0_16 = arith.constant 0 : index
    %c0_17 = arith.constant 0 : index
    %28 = vector.load %arg5[%c0_16, %c0_17] : memref<32x32xf32, #tpu.memory_space<vmem>>, vector<16x32xf32>
    %cst_18 = arith.constant dense<0.000000e+00> : vector<8x32xf32>
    %29 = tpu.matmul %27, %28, %cst_18 {dimension_numbers = #tpu.dot_dimension_numbers<[1], [0], [0], [1], [0, 0, 1, 1], [], []>} : vector<8x16xf32>, vector<16x32xf32>, vector<8x32xf32> -> vector<8x32xf32>
    %30 = arith.addf %12, %29 : vector<8x32xf32>
    %31 = vector.extract_strided_slice %7 {offsets = [0, 16], sizes = [8, 16], strides = [1, 1]} : vector<8x32xf32> to vector<8x16xf32>
    %32 = vector.extract_strided_slice %10 {offsets = [0, 16], sizes = [8, 16], strides = [1, 1]} : vector<8x32xf32> to vector<8x16xf32>
    %33 = vector.extract_strided_slice %11 {offsets = [0, 16], sizes = [8, 16], strides = [1, 1]} : vector<8x32xf32> to vector<8x16xf32>
    %cst_19 = arith.constant dense<0.000000e+00> : vector<8x8xf32>
    %34 = tpu.matmul %31, %32, %cst_19 {dimension_numbers = #tpu.dot_dimension_numbers<[1], [1], [0], [0], [0, 0, 1, 0], [], []>} : vector<8x16xf32>, vector<8x16xf32>, vector<8x8xf32> -> vector<8x8xf32>
    %cst_20 = arith.constant dense<0xFF800000> : vector<8xf32>
    %35 = vector.multi_reduction <maximumf>, %34, %cst_20 [1] : vector<8x8xf32> to vector<8xf32>
    %36 = vector.shape_cast %35 : vector<8xf32> to vector<8x1xf32>
    %37 = vector.broadcast %36 : vector<8x1xf32> to vector<8x8xf32>
    %38 = arith.subf %34, %37 : vector<8x8xf32>
    %39 = math.exp %38 : vector<8x8xf32>
    %cst_21 = arith.constant dense<0.000000e+00> : vector<8xf32>
    %40 = vector.multi_reduction <add>, %39, %cst_21 [1] : vector<8x8xf32> to vector<8xf32>
    %41 = vector.shape_cast %40 : vector<8xf32> to vector<8x1xf32>
    %42 = tpu.reciprocal %41 {approx = true} : vector<8x1xf32> -> vector<8x1xf32>
    %43 = vector.broadcast %42 : vector<8x1xf32> to vector<8x8xf32>
    %44 = arith.mulf %39, %43 : vector<8x8xf32>
    %cst_22 = arith.constant dense<0.000000e+00> : vector<8x16xf32>
    %45 = tpu.matmul %44, %33, %cst_22 {dimension_numbers = #tpu.dot_dimension_numbers<[1], [0], [0], [1], [0, 0, 1, 1], [], []>} : vector<8x8xf32>, vector<8x16xf32>, vector<8x16xf32> -> vector<8x16xf32>
    %c16 = arith.constant 16 : index
    %c0_23 = arith.constant 0 : index
    %46 = vector.load %arg5[%c16, %c0_23] : memref<32x32xf32, #tpu.memory_space<vmem>>, vector<16x32xf32>
    %cst_24 = arith.constant dense<0.000000e+00> : vector<8x32xf32>
    %47 = tpu.matmul %45, %46, %cst_24 {dimension_numbers = #tpu.dot_dimension_numbers<[1], [0], [0], [1], [0, 0, 1, 1], [], []>} : vector<8x16xf32>, vector<16x32xf32>, vector<8x32xf32> -> vector<8x32xf32>
    %48 = arith.addf %30, %47 : vector<8x32xf32>
    %c0_25 = arith.constant 0 : index
    %c0_26 = arith.constant 0 : index
    %49 = vector.load %arg6[%c0_25, %c0_26] : memref<1x32xf32, #tpu.memory_space<vmem>>, vector<1x32xf32>
    %50 = vector.broadcast %49 : vector<1x32xf32> to vector<8x32xf32>
    %51 = arith.addf %48, %50 : vector<8x32xf32>
    %c0_27 = arith.constant 0 : index
    %c0_28 = arith.constant 0 : index
    %c0_29 = arith.constant 0 : index
    %52 = vector.load %arg7[%c0_27, %c0_28, %c0_29] : memref<1x8x32xf32, #tpu.memory_space<vmem>>, vector<1x8x32xf32>
    %53 = vector.shape_cast %52 : vector<1x8x32xf32> to vector<8x32xf32>
    %54 = vector.shape_cast %51 : vector<8x32xf32> to vector<1x8x32xf32>
    tpu.vector_store %arg7[%c0_27, %c0_28, %c0_29], %54 {strides = array<i32>} : memref<1x8x32xf32, #tpu.memory_space<vmem>>, vector<1x8x32xf32>,
    return
  }
  func.func @transform_0(%arg0: i32) -> (i32, i32, i32) {
    %c0_i32 = arith.constant 0 : i32
    %c0_i32_0 = arith.constant 0 : i32
    %c0_i32_1 = arith.constant 0 : i32
    return %arg0, %c0_i32, %c0_i32_0 : i32, i32, i32
  }
  func.func @transform_1(%arg0: i32) -> (i32, i32, i32) {
    %c0_i32 = arith.constant 0 : i32
    %c0_i32_0 = arith.constant 0 : i32
    %c0_i32_1 = arith.constant 0 : i32
    return %arg0, %c0_i32, %c0_i32_0 : i32, i32, i32
  }
  func.func @transform_2(%arg0: i32) -> (i32, i32) {
    %c0_i32 = arith.constant 0 : i32
    %c0_i32_0 = arith.constant 0 : i32
    %c0_i32_1 = arith.constant 0 : i32
    return %c0_i32, %c0_i32_0 : i32, i32
  }
  func.func @transform_3(%arg0: i32) -> (i32, i32) {
    %c0_i32 = arith.constant 0 : i32
    %c0_i32_0 = arith.constant 0 : i32
    %c0_i32_1 = arith.constant 0 : i32
    return %c0_i32, %c0_i32_0 : i32, i32
  }
  func.func @transform_4(%arg0: i32) -> (i32, i32) {
    %c0_i32 = arith.constant 0 : i32
    %c0_i32_0 = arith.constant 0 : i32
    %c0_i32_1 = arith.constant 0 : i32
    return %c0_i32, %c0_i32_0 : i32, i32
  }
  func.func @transform_5(%arg0: i32) -> (i32, i32) {
    %c0_i32 = arith.constant 0 : i32
    %c0_i32_0 = arith.constant 0 : i32
    %c0_i32_1 = arith.constant 0 : i32
    return %c0_i32, %c0_i32_0 : i32, i32
  }
  func.func @transform_6(%arg0: i32) -> (i32, i32, i32) {
    %c0_i32 = arith.constant 0 : i32
    %c0_i32_0 = arith.constant 0 : i32
    %c0_i32_1 = arith.constant 0 : i32
    return %arg0, %c0_i32, %c0_i32_0 : i32, i32, i32
  }
}

</mosaic_0001>

<bundles_post_ra>
// kernel: tpu_custom_call.1
= control target key start
LH: loop header
LB: loop body
LE: loop exit
PB: predicated region body
PF: predicated region fallthrough
CT: control target
= control target key end

     0   :  { %s1346_s0 = inlined_call_operand.hbm [shape: f32[2,8,32], index: 0, kind: input, shape index: {}]   ;;  %s1347_s1 = inlined_call_operand.hbm [shape: f32[2,8,32], index: 1, kind: input, shape index: {}]   ;;  %s1348_s2 = inlined_call_operand.hbm [shape: f32[32,32], index: 2, kind: input, shape index: {}]   ;;  %s1349_s3 = inlined_call_operand.hbm [shape: f32[32,64], index: 3, kind: input, shape index: {}]   ;;  %s1350_s4 = inlined_call_operand.hbm [shape: f32[32,32], index: 4, kind: input, shape index: {}]   ;;  %s1351_s5 = inlined_call_operand.vmem [shape: f32[1,32], index: 5, kind: input, shape index: {}]   ;;  %s1352_s6 = inlined_call_operand.hbm [shape: f32[2,8,32], index: 6, kind: output, shape index: {}]  }
   0x1   :  { %1354 = sst [smem:[#allocation19_spill]] %s1348_s2 }
   0x2   :  { %1355 = sst [smem:[#allocation20_spill]] %s1349_s3 }
   0x3   :  { %1356 = sst [smem:[#allocation21_spill]] %s1350_s4 }
   0x4   :  { %11 = vsyncpa [#allocation3], 0 }
   0x5   :  { %13 = vsyncpa [#allocation3 + $0x1], 0 }
   0x6   :  { %14 = vsyncpa [#allocation6], 0 }
   0x7   :  { %16 = vsyncpa [#allocation6 + $0x1], 0 }
   0x8   :  { %17 = vsyncpa [#allocation9], 0 }
   0x9   :  { %18 = vsyncpa [#allocation4], 0 }
   0xa   :  { %20 = vsyncpa [#allocation4 + $0x1], 0  ;;  %s1138_s21 = smov 0   ;;  %s1140_s22 = smov 0  }
   0xb   :  { %s1142_s23 = smov 0   ;;  %s1144_s24 = smov 0  }
   0xc LB: > { %1357 = sst [smem:[#allocation17_spill]] %s1089_s23  ;;  %s1162_s28 = sadd.s32 4294967295, %s1093_s24   ;;  %s1093_s24 = sphi %s1144_s24, %s1374_s24   ;;  %s1089_s23 = sphi %s1142_s23, %s1371_s23   ;;  %s1085_s22 = sphi %s1140_s22, %s1373_s22   ;;  %s1081_s21 = sphi %s1138_s21, %s1372_s21  }
   0xd   : > { %s1358_s2 = sld [smem:[#allocation19_spill]]  ;;  %p739_p0 = scmp.ge.s32.totalorder %s1093_s24, 1 }
   0xe   : > { %p47_p1 = scmp.eq.s32.totalorder %s1162_s28, 0  ;;  %p193_p2 = scmp.lt.s32.totalorder %s1093_s24, 3 }
   0xf   : > { %s1095_s30 = smov [#allocation7]   ;;  %s1360_s3 = sld [smem:[#allocation20_spill]] }
  0x10   : > { %p1167_p3 = pnand %p739_p0, %p193_p2  ;;  %s206_s7 = sshll.u32 %s1095_s30, 4  ;;  %s207_s7 = int_to_ptr.vmem [resolvable:$true] %s206_s7 }
  0x11   : > { %s1362_s4 = sld [smem:[#allocation21_spill]]  ;;  %s1096_s15 = smov [#allocation8]  }
  0x12   : > { %p787_p4 = pneg %p1167_p3  ;;  %s220_s16 = sshll.u32 %s1096_s15, 4  ;;  %s221_s16 = int_to_ptr.vmem [resolvable:$true] %s220_s16 }
  0x13   : > { %s204_s27 = sshll.u32 %s1358_s2, 4  ;;  %s1097_s17 = smov 128   ;;  %s205_s27 = int_to_ptr.hbm [resolvable:$true] %s204_s27 }
  0x14   : > { %p1179_p6 = pnand %p787_p4, %p47_p1  ;;  %s1098_s18 = smov 8  }
  0x15   : > { %s218_s10 = sshll.u32 %s1360_s3, 4  ;;  %s1099_s19 = smov [#allocation10]   ;;  %s219_s10 = int_to_ptr.hbm [resolvable:$true] %s218_s10 }
  0x16   : > { %790 = dma.hbm_to_vmem [thread:$0]  (!%p1179_p6), %s205_s27, 512, %s207_s7, [#allocation6], %s1097_s17, %s1097_s17, %s1098_s18  }
  0x17   : > { %s232_s14 = sshll.u32 %s1362_s4, 4  ;;  %s234_s20 = sshll.u32 %s1099_s19, 4  ;;  %s233_s14 = int_to_ptr.hbm [resolvable:$true] %s232_s14  ;;  %s235_s20 = int_to_ptr.vmem [resolvable:$true] %s234_s20 }
  0x18   : > { %793 = dma.hbm_to_vmem [thread:$0]  (!%p1179_p6), %s219_s10, 512, %s221_s16, [#allocation9], %s1097_s17, %s1097_s17, %s1098_s18  }
  0x19   : > { %796 = dma.hbm_to_vmem [thread:$0]  (!%p1179_p6), %s233_s14, 512, %s235_s20, [#allocation9], %s1097_s17, %s1097_s17, %s1098_s18  }
  0x1a   : > { %s738_s25 = sadd.s32 4294967294, %s1093_s24   ;;  %s1194_s26 = sadd.s32 1, %s1093_s24  }
  0x1b   : > { %s33_s30 = sadd.s32 1, %s1089_s23  ;;  %s30_s27 = ssub.s32 %s1093_s24, %s1194_s26 }
  0x1c   : > { %p40_p7 = scmp.ne.s32.totalorder %s1089_s23, %s1085_s22  ;;  %p31_p8 = scmp.eq.s32.totalorder %s30_s27, 0 }
  0x1d   : > { %p41_p9 = scmp.eq.s32.totalorder %s1093_s24, 0  ;;  %p46_p10 = scmp.ne.s32.totalorder %s1085_s22, %s1081_s21 }
  0x1e   : > { %p180_p11 = scmp.eq.s32.totalorder %s1162_s28, 1  ;;  %p186_p2 = scmp.eq.s32.totalorder %s738_s25, 1 }
  0x1f   : > { %s1206_s7 = scalar_select %p31_p8, %s1089_s23, %s33_s30  }
  0x20   : > { %p1208_p12 = por %p41_p9, %p40_p7  ;;  %p1214_p13 = por %p47_p1, %p46_p10 }
  0x21   : > { %1363 = sst [smem:[#allocation18_spill]] %s1206_s7  ;;  %p1218_p0 = por %p180_p11, %p40_p7 }
  0x22   : > { %p811_p4 = scmp.lt.s32.totalorder %s1093_s24, 2  ;;  %s251_s11 = sand.u32 1, %s1089_s23  }
  0x23   : > { %p1224_p6 = por %p186_p2, %p46_p10  ;;  %s744_s13 = sshll.u32 %s251_s11, 3 }
  0x24   : > { %s745_s14 = sshll.u32 %s1093_s24, 3  ;;  %s255_s19 = scalar_lea.vmem [#allocation2], %s744_s13 }
  0x25   : > { %s259_s17 = scalar_lea.hbm %s1346_s0, %s745_s14  ;;  %s263_s20 = sshll.u32 %s255_s19, 4  ;;  %s264_s20 = int_to_ptr.vmem [resolvable:$true] %s263_s20 }
  0x26   : > { %s261_s18 = sshll.u32 %s259_s17, 4  ;;  %p1234_p7 = pnand %p811_p4, %p1208_p12  ;;  %s262_s18 = int_to_ptr.hbm [resolvable:$true] %s261_s18 }
  0x27   : > { %s278_s2 = scalar_lea.hbm %s1347_s1, %s745_s14  ;;  %s270_s3 = sand.u32 1, %s1093_s24  }
  0x28   : > { %s252_s4 = scalar_lea.sflag [#allocation3], %s251_s11  ;;  %s955_s15 = sshra.s32 %s262_s18, 4  ;;  %s956_s15 = int_to_ptr.hbm [resolvable:$true] %s955_s15 }
  0x29   : > { %s957_s16 = scalar_lea.hbm %s956_s15, 8  ;;  %p959_p9 = pneg %p1234_p7 }
  0x2a   : > { %p958_p8 = scmp.ne.s32.totalorder %s956_s15, %s957_s16  ;;  %s962_s19 = scalar_lea.hbm %s1346_s0, 16 }
  0x2b   : > { %p963_p12 = scmp.lt.s32.totalorder %s956_s15, %s1346_s0  ;;  %p964_p2 = scmp.lt.s32.totalorder %s962_s19, %s957_s16 }
  0x2c   : > { %p960_p10 = pnand %p959_p9, %p958_p8 }
  0x2d   : > { %p965_p4 = por %p964_p2, %p963_p12 }
  0x2e   : > { %p961_p11 = pneg %p960_p10 }
  0x30   : > { %p966_p5 = pnand %p965_p4, %p961_p11 }
  0x32   : > { %969 = shalt.err (!%p966_p5)
}
  0x33   : > { %800 = dma.hbm_to_vmem [thread:$0]  (!%p1234_p7), %s262_s18, 128, %s264_s20, %s252_s4  }
  0x34   : > { %s280_s11 = sshll.u32 %s278_s2, 4  ;;  %s274_s14 = scalar_lea.vmem [#allocation5], %s744_s13  ;;  %s281_s11 = int_to_ptr.hbm [resolvable:$true] %s280_s11 }
  0x35   : > { %s282_s7 = sshll.u32 %s274_s14, 4  ;;  %s271_s23 = scalar_lea.sflag [#allocation6], %s270_s3  ;;  %s283_s7 = int_to_ptr.vmem [resolvable:$true] %s282_s7 }
  0x36   : > { %s985_s8 = sshra.s32 %s281_s11, 4  ;;  %s992_s19 = scalar_lea.hbm %s1347_s1, 16  ;;  %s986_s8 = int_to_ptr.hbm [resolvable:$true] %s985_s8 }
  0x37   : > { %s987_s17 = scalar_lea.hbm %s986_s8, 8  ;;  %p993_p5 = scmp.lt.s32.totalorder %s986_s8, %s1347_s1 }
  0x38   : > { %p988_p8 = scmp.ne.s32.totalorder %s986_s8, %s987_s17  ;;  %p994_p11 = scmp.lt.s32.totalorder %s992_s19, %s987_s17 }
  0x3a   : > { %p990_p10 = pnand %p988_p8, %p959_p9  ;;  %p995_p2 = por %p994_p11, %p993_p5 }
  0x3c   : > { %p991_p12 = pneg %p990_p10 }
  0x3e   : > { %p996_p4 = pnand %p995_p2, %p991_p12 }
  0x40   : > { %999 = shalt.err (!%p996_p4)
}
  0x41   : > { %803 = dma.hbm_to_vmem [thread:$0]  (!%p1234_p7), %s281_s11, 128, %s283_s7, %s271_s23  }
  0x42   : > { %291 = sbr.rel (%p1167_p3) target bundleno = 1261 (0x4ed), region = 44  ;;  %s1269_s2 = sand.u32 (!%p1167_p3), 1, %s1085_s22  }
  0x43   : > { %s1272_s3 = sshll.u32 (!%p1167_p3), %s1269_s2, 3  ;;  %s294_s13 = scalar_lea.sflag (!%p1167_p3), [#allocation3], %s1269_s2 }
  0x44   : > { %s297_s18 = scalar_lea.vmem (!%p1167_p3), [#allocation2], %s1272_s3 }
  0x47   : > { %1060 = dma.done.wait (%p1214_p13), %s294_s13, 128  }
  0x48   : > { %1062 = vsyncadd (%p1214_p13), %s294_s13, 4294967168  ;;  %s303_s23 = sand.u32 1, %s1162_s28   ;;  %s307_s7 = scalar_lea.vmem [#allocation5], %s1272_s3 }
  0x49   : > { %s304_s29 = scalar_lea.sflag [#allocation6], %s303_s23 }
  0x4a   : > { %1064 = dma.done.wait (%p1214_p13), %s304_s29, 128  }
  0x4b   : > { %1066 = vsyncadd (%p1214_p13), %s304_s29, 4294967168 }
  0x4c   : > { %1068 = dma.done.wait (%p47_p1), [#allocation6], 512  }
  0x4d   : > { %1070 = vsyncadd (%p47_p1), [#allocation6], 4294966784 }
  0x4e   : > { %1072 = dma.done.wait (%p47_p1), [#allocation9], 1024  }
  0x4f   : > { %1074 = vsyncadd (%p47_p1), [#allocation9], 4294966272  ;;  %v391_v0 = vld [vmem:[#allocation8 + $0x18] sm:$0xff]  ;;  %v390_v2 = vld [vmem:[#allocation8 + $0x10] sm:$0xff]  ;;  %vm363_vm0 = vcmask 261120   ;;  %vm415_vm1 = vcmask 130048  }
  0x50   : > { %v362_v1 = vld [vmem:[#allocation7 + $0x18] sm:$0xff]  ;;  %407 = vmatpush.msra.mxu1 %v391_v0  ;;  %v361_v3 = vld [vmem:[#allocation7 + $0x10] sm:$0xff]  ;;  %v389_v4 = vld [vmem:[#allocation8 + $0x8] sm:$0xff]  ;;  %s1100_s9 = smov 96   ;;  %s1101_s20 = smov 112   ;;  %vm442_vm2 = vcmask 64512  }
  0x51   : > { %379 = vmatpush.msra.mxu0 %v362_v1  ;;  %v360_v5 = vld [vmem:[#allocation7 + $0x8] sm:$0xff]  ;;  %v388_v6 = vld [vmem:[#allocation8] sm:$0xff]  ;;  %v358_v8 = vld [vmem:[%s307_s7] sm:$0xff]  ;;  %s1102_s25 = smov 80   ;;  %s766_s27 = sshll.u32 %s1162_s28, 3 }
  0x52   : > { %408 = vmatpush.msra.mxu1 %v390_v2  ;;  %v359_v7 = vld [vmem:[#allocation7] sm:$0xff]  ;;  %v481_v23 = vld [vmem:[#allocation10 + $0x8] sm:$0xff]  ;;  %v548_v37 = vld [vmem:[#allocation10 + $0x18] sm:$0xff]  ;;  %s612_s8 = scalar_lea.hbm %s1352_s6, %s766_s27  ;;  %s356_s16 = scalar_lea.vmem [#allocation11], %s1272_s3 }
  0x53   : > { %380 = vmatpush.msra.mxu0 %v361_v3  ;;  %v357_v9 = vld [vmem:[%s297_s18] sm:$0xff]  ;;  %v547_v38 = vld [vmem:[#allocation10 + $0x10] sm:$0xff]  ;;  %s614_s19 = sshll.u32 %s356_s16, 4  ;;  %s616_s30 = sshll.u32 %s612_s8, 4  ;;  %s615_s19 = int_to_ptr.vmem [resolvable:$true] %s614_s19  ;;  %s617_s30 = int_to_ptr.hbm [resolvable:$true] %s616_s30 }
  0x54   : > { %409 = vmatpush.msra.mxu1 %v389_v4  ;;  %v480_v28 = vld [vmem:[#allocation10] sm:$0xff]  ;;  %s602_s28 = scalar_lea.sflag [#allocation4], %s1269_s2  ;;  %s1029_s4 = sshra.s32 %s617_s30, 4  ;;  %s1030_s4 = int_to_ptr.hbm [resolvable:$true] %s1029_s4 }
  0x55   : > { %381 = vmatpush.msra.mxu0 %v360_v5  ;;  %v856_v43 = vld [vmem:[%s1351_s5] ss:$0 sm:$0xff]  ;;  %s1031_s13 = scalar_lea.hbm %s1030_s4, 8  ;;  %s1035_s3 = scalar_lea.hbm %s1352_s6, 16 }
  0x56   : > { %410 = vmatpush.msra.mxu1 %v388_v6  ;;  %p1032_p1 = scmp.ne.s32.totalorder %s1030_s4, %s1031_s13  ;;  %p1036_p7 = scmp.lt.s32.totalorder %s1030_s4, %s1352_s6 }
  0x57   : > { %382 = vmatpush.msra.mxu0 %v359_v7  ;;  %756 = vmatmul.msk.f32.vlgmr.msra.gmra.mxu1 %vm363_vm0, %v358_v8  ;;  %p1037_p9 = scmp.lt.s32.totalorder %s1035_s3, %s1031_s13 }
  0x58   : > { %755 = vmatmul.msk.f32.vlgmr.msra.gmra.mxu0 %vm363_vm0, %v357_v9  ;;  %589 = vmatpush.msrb.mxu1 %v481_v23  ;;  %p1033_p3 = pnand %p1032_p1, %p1218_p0 }
  0x59   : > { %566 = vmatpush.msrb.mxu0 %v548_v37  ;;  %p1038_p8 = por %p1037_p9, %p1036_p7 }
  0x5a   : > { %590 = vmatpush.msrb.mxu1 %v480_v28  ;;  %p1034_p13 = pneg %p1033_p3 }
  0x5b   : > { %567 = vmatpush.msrb.mxu0 %v547_v38 }
  0x5c   : > { %p1039_p10 = pnand %p1038_p8, %p1034_p13 }
  0xd4   : > { %v412_v10 = vpop.f32.mrf.mxu1 }
  0xd5   : > { %v384_v11 = vpop.f32.mrf.mxu0  ;;  %454 = vrot.lane.b32.xlu1 %v412_v10, %s1100_s9  ;;  %757 = vmatpush.xpose.msk.msra.mxu2 %vm415_vm1, %v412_v10 }
  0xd6   : > { %v387_v12 = vmul.f32 0.25, %v384_v11 }
  0xd8   : > { %482 = vrot.lane.b32.xlu2 %v387_v12, %s1101_s20  ;;  %758 = vmatmul.msk.f32.vlgmr.msra.gmra.mxu2 %vm415_vm1, %v387_v12 }
  0xdd   : > { %484 = vrot.lane.b32.xlu1 %v412_v10, %s1101_s20 }
  0xe5   : > { %521 = vrot.lane.b32.xlu1 %v412_v10, %s1102_s25 }
 0x132   : > { %v483_v27 = vpop.permute.xlu2 %482 }
 0x147   : > { %v455_v13 = vpop.permute.xlu1 %454 }
 0x148   : > { %475 = vmatpush.msra.mxu3 %v455_v13 }
 0x14f   : > { %v485_v14 = vpop.permute.xlu1 %484 }
 0x150   : > { %760 = vmatpush.xpose.msk.msrb.mxu3 %vm415_vm1, %v485_v14 }
 0x157   : > { %v522_v15 = vpop.permute.xlu1 %521 }
 0x158   : > { %542 = vmatpush.msrb.mxu2 %v522_v15 }
 0x15b   : > { %v439_v16 = vpop.f32.mrf.mxu2 }
 0x15c   : > { %v443_v17 = vsel %vm442_vm2, %v439_v16, -inf }
 0x15d   : > { %444 = vmax.xlane.f32.xlu0 %v443_v17 }
 0x1d0   : > { %v445_v18 = vpop.xlane.xlu0 %444 }
 0x1d1   : > { %v446_v19 = vsub.f32 %v439_v16, %v445_v18 }
 0x1d3   : > { %v447_v20 = vmul.f32 1.442695, %v446_v19 }
 0x1d5   : > { %857 = vpow2.f32 %v447_v20 }
 0x1db   : > { %v858_v21 = vpop.eup %857 }
 0x1dc   : > { %v449_v22 = vsel %vm442_vm2, %v858_v21, 0.0 }
 0x1dd   : > { %450 = vadd.xlane.f32.xlu0 %v449_v22 }
 0x250   : > { %v451_v24 = vpop.xlane.xlu0 %450 }
 0x251   : > { %859 = vrcp.f32 %v451_v24 }
 0x257   : > { %v860_v25 = vpop.eup %859 }
 0x258   : > { %v453_v26 = vmul.f32 %v860_v25, %v858_v21 }
 0x25a   : > { %759 = vmatmul.msk.f32.vlgmr.msra.gmra.mxu3 %vm442_vm2, %v453_v26 }
 0x262   : > { %761 = vmatmul.msk.f32.vlgmr.msrb.gmra.mxu3 %vm415_vm1, %v483_v27 }
 0x2dd   : > { %v477_v29 = vpop.f32.mrf.mxu3 }
 0x2de   : > { %764 = vmatmul.msk.f32.vlgmr.msrb.gmra.mxu1 %vm415_vm1, %v477_v29 }
 0x2e5   : > { %v507_v30 = vpop.f32.mrf.mxu3 }
 0x2e6   : > { %v510_v31 = vsel %vm442_vm2, %v507_v30, -inf }
 0x2e7   : > { %511 = vmax.xlane.f32.xlu2 %v510_v31 }
 0x35a   : > { %v512_v32 = vpop.xlane.xlu2 %511 }
 0x35b   : > { %v513_v33 = vsub.f32 %v507_v30, %v512_v32  ;;  %v592_v44 = vpop.f32.mrf.mxu1 }
 0x35d   : > { %v514_v34 = vmul.f32 1.442695, %v513_v33 }
 0x35f   : > { %861 = vpow2.f32 %v514_v34 }
 0x365   : > { %v862_v35 = vpop.eup %861 }
 0x366   : > { %v516_v36 = vsel %vm442_vm2, %v862_v35, 0.0 }
 0x367   : > { %517 = vadd.xlane.f32.xlu0 %v516_v36 }
 0x3da   : > { %v518_v39 = vpop.xlane.xlu0 %517 }
 0x3db   : > { %863 = vrcp.f32 %v518_v39 }
 0x3e1   : > { %v864_v40 = vpop.eup %863 }
 0x3e2   : > { %v520_v41 = vmul.f32 %v864_v40, %v862_v35 }
 0x3e4   : > { %762 = vmatmul.msk.f32.vlgmr.msrb.gmra.mxu2 %vm442_vm2, %v520_v41 }
 0x467   : > { %v544_v42 = vpop.f32.mrf.mxu2 }
 0x468   : > { %763 = vmatmul.msk.f32.vlgmr.msrb.gmra.mxu0 %vm415_vm1, %v544_v42 }
 0x4e5   : > { %v569_v45 = vpop.f32.mrf.mxu0 }
 0x4e6   : > { %v593_v46 = vadd.f32 %v592_v44, %v569_v45 }
 0x4e8   : > { %v599_v47 = vadd.f32 %v856_v43, %v593_v46 }
 0x4ea   : > { %600 = vst.msk [vmem:[%s356_s16] sm:$0xff] %vm363_vm0, %v599_v47 }
 0x4eb   : > { %1042 = shalt.err (!%p1039_p10)
}
 0x4ec   : > { %785 = dma.vmem_to_hbm [thread:$0]  (%p1218_p0), %s615_s19, 128, %s617_s30, %s602_s28  }
 0x4ed PF: > { %s628_s2 = sand.u32 1, %s1081_s21   ;;  %p1369_p12 = scmp.ge.s32.totalorder %s1093_s24, 2 }
 0x4ee   : > { %s629_s9 = scalar_lea.sflag [#allocation4], %s628_s2 }
 0x4ef   : > { %p805_p5 = pnand %p1369_p12, %p1224_p6 }
 0x4f1   : > { %p806_p11 = pneg %p805_p5 }
 0x4f3   : > { %1076 = dma.done.wait (%p806_p11), %s629_s9, 128  }
 0x4f4   : > { %1078 = vsyncadd (%p806_p11), %s629_s9, 4294967168  ;;  %s1370_s20 = sld [smem:[#allocation17_spill]]  ;;  %p23_p2 = scmp.ge.s32.totalorder %s1194_s26, 4  }
 0x4f5   : > { %s1371_s23 = sld [smem:[#allocation18_spill]]  ;;  %s1372_s21 = smov %s1085_s22 }
 0x4f6   : > { %s1374_s24 = smov %s1194_s26  ;;  %25 = sbr.rel (!%p23_p2) target bundleno = 12 (0xc), region = 114 }
 0x4fa   : > { %s1373_s22 = smov %s1370_s20 }
 0x4fb   :  { %635 = vsyncpa [#allocation3], 1 }
 0x4fc   :  { %637 = vsyncpa [#allocation3 + $0x1], 1 }
 0x4fd   :  { %638 = vsyncpa [#allocation6], 1 }
 0x4fe   :  { %640 = vsyncpa [#allocation6 + $0x1], 1 }
 0x4ff   :  { %641 = vsyncpa [#allocation9], 1 }
 0x500   :  { %642 = vsyncpa [#allocation4], 1 }
 0x501   :  { %644 = vsyncpa [#allocation4 + $0x1], 1 }

</bundles_post_ra>
